<compile_context>
chip_gen: v7x
topology: tpu7x:2x2x1
jax: 0.10.0
libtpu: 0.0.40
codegen_flags: <defaults>
</compile_context>

<pallas_src>
import functools

import jax
import jax.numpy as jnp
import numpy as np
from jax.experimental import pallas as pl
from jax.experimental.pallas import tpu as pltpu

IGNORE_INDEX = -100
EPS = 1e-10
_CLASS_WEIGHTS_NP = np.array(
    [1.0, 20.0, 7.0, 6.0, 7.0, 5.0, 3.0, 39.0, 44.0, 8.0, 25.0, 1.0, 47.0, 13.0],
    dtype=np.float32,
)


def _criterion_kernel(outp_ref, labels_ref, mask_ref, w_ref, out_ref,
                      num_acc_ref, den_acc_ref, mse_acc_ref, carry_ref):
    """Per-(batch row, T tile) element-wise accumulation of the two loss terms.

    outp_ref:    (1, C, Tt) probabilities (f32 or bf16; upcast to f32 here)
    labels_ref:  (1, 1, Tt) int targets (-100 = ignore), cast to int32 in-kernel
    mask_ref:    (1, 1, Tt) mask (any float/int dtype), cast to f32 in-kernel
    w_ref:       (1, C, 1)  f32 class weights (constant block, fetched once)
    out_ref:     (1, 8, 128) f32; lane 0 = ce_num, lane 1 = ce_den, lane 2 = mse_sum
    num_acc_ref: (1, Tt) VMEM — per-lane partial of w[label] * (-log_softmax[label])
    den_acc_ref: (1, Tt) VMEM — per-lane partial of w[label]
    mse_acc_ref: (C, Tt) VMEM — element-wise partial of clamp(diff^2) * mask
    carry_ref:   (C, 1)  VMEM — last log column of the previous T tile (halo)
    """
    C, Tt = outp_ref.shape[1], outp_ref.shape[2]
    t = pl.program_id(1)
    t_last = pl.num_programs(1) - 1

    x = outp_ref[0].astype(jnp.float32)            # (C, Tt)
    logx = jnp.log(x + EPS)                        # outp_wo_softmax

    @pl.when(t == 0)
    def _():
        num_acc_ref[...] = jnp.zeros_like(num_acc_ref)
        den_acc_ref[...] = jnp.zeros_like(den_acc_ref)
        mse_acc_ref[...] = jnp.zeros_like(mse_acc_ref)
        # First column of the sequence has no predecessor: make its diff exactly zero.
        carry_ref[...] = logx[:, 0:1]

    # CrossEntropy applies log_softmax over classes to logx. Since exp(logx) = x + EPS
    # exactly (x >= 0 probabilities), logsumexp(logx) = log(sum_c x + C*EPS):
    # no exp / running max needed.
    lse = jnp.log(jnp.sum(x, axis=0, keepdims=True) + C * EPS)          # (1, Tt)

    labels = labels_ref[0].astype(jnp.int32)       # (1, Tt)
    cls_iota = jax.lax.broadcasted_iota(jnp.int32, (C, Tt), 0)
    # -100 (and any out-of-range label) matches no class -> weight 0, contribution 0.
    hit = cls_iota == labels                       # (C, Tt) target-class mask
    w_col = w_ref[0]                               # (C, 1)

    picked_logx = jnp.sum(jnp.where(hit, logx, 0.0), axis=0, keepdims=True)   # (1, Tt)
    w_bt = jnp.sum(jnp.where(hit, w_col, 0.0), axis=0, keepdims=True)         # (1, Tt)
    neg_logp = lse - picked_logx                   # -log_softmax(logx)[label]

    num_acc_ref[...] += w_bt * neg_logp
    den_acc_ref[...] += w_bt

    # ---- 0.15 * mean(clamp((logx[:,:,1:] - logx[:,:,:-1])^2, 0, 16) * mask[:,:,1:]) ----
    # (.detach() only affects gradients; the forward value is identical.)
    prev = pltpu.roll(logx, shift=1, axis=1)       # prev[:, j] = logx[:, j-1] (wraps at 0)
    lane0 = jax.lax.broadcasted_iota(jnp.int32, (C, Tt), 1) == 0
    prev = jnp.where(lane0, carry_ref[...], prev)  # halo column from the previous tile
    diff = logx - prev
    sq = jnp.minimum(diff * diff, 16.0)            # clamp(min=0) is a no-op for squares
    mask = mask_ref[0].astype(jnp.float32)         # (1, Tt), broadcasts over classes
    mse_acc_ref[...] += sq * mask
    carry_ref[...] = logx[:, Tt - 1:Tt]            # halo for the next tile

    # ---- finalize: cross-lane reduce + lane-dense output write, once per batch row ----
    @pl.when(t == t_last)
    def _():
        ce_num = jnp.sum(num_acc_ref[...])
        ce_den = jnp.sum(den_acc_ref[...])
        mse_sum = jnp.sum(mse_acc_ref[...])
        lane = jax.lax.broadcasted_iota(jnp.int32, out_ref.shape[1:], 1)
        out_ref[0] = jnp.where(lane == 0, ce_num,
                     jnp.where(lane == 1, ce_den,
                     jnp.where(lane == 2, mse_sum, 0.0)))


def _pick_tile_t(T):
    # Prefer big tiles: a (1, 14, tile_t) f32 block is only ~56*tile_t bytes, so even
    # tile_t=16384 is < 1 MiB per buffer — fits comfortably on v5e/v6e/v7x and
    # amortizes the ~0.35 us per-grid-step overhead.
    for cand in (16384, 8192, 4096, 2048, 1024, 512, 256, 128):
        if T % cand == 0:
            return cand
    return T   # single full-width tile: always layout-legal


@functools.partial(jax.jit, static_argnames=("tile_t",))
def criterion(outp, labels, src_mask, labels_present=None, *, tile_t=None):
    """outp: (B, C, T) probabilities (f32 or bf16 — feed bf16 to halve HBM traffic;
    all math runs in f32 inside the kernel). labels: (B, T) int (-100 ignored).
    src_mask: (B, 1, T) float/bool. labels_present is unused (parity with torch)."""
    del labels_present                             # unused in the torch forward as well
    B, C, T = outp.shape
    if tile_t is None or T % tile_t != 0:
        tile_t = _pick_tile_t(T)

    # No materialized wrapper-side casts of the big (B, T) streams: reshapes are
    # metadata-only; dtype conversion (if any) happens inside the kernel.
    if jnp.dtype(labels.dtype).itemsize > 4:       # Pallas TPU is 32-bit
        labels = labels.astype(jnp.int32)
    labels3 = labels.reshape(B, 1, T)
    mask3 = src_mask.reshape(B, 1, T)
    if mask3.dtype == jnp.bool_:
        mask3 = mask3.astype(jnp.float32)

    # 56-byte constant block; its index_map never changes, so it is fetched once.
    w = jnp.asarray(_CLASS_WEIGHTS_NP).reshape(1, C, 1)
    itemsize = jnp.dtype(outp.dtype).itemsize

    partials = pl.pallas_call(
        _criterion_kernel,
        out_shape=jax.ShapeDtypeStruct((B, 8, 128), jnp.float32),
        grid_spec=pltpu.PrefetchScalarGridSpec(
            num_scalar_prefetch=0,
            # B is the leading "parallel" axis -> sharded across TensorCores on v7x
            # megacore (for B >= 2). The T axis must stay "arbitrary": carry_ref makes
            # it strictly sequential per batch row.
            grid=(B, T // tile_t),
            in_specs=[
                pl.BlockSpec((1, C, tile_t), lambda b, t: (b, 0, t)),
                pl.BlockSpec((1, 1, tile_t), lambda b, t: (b, 0, t)),
                pl.BlockSpec((1, 1, tile_t), lambda b, t: (b, 0, t)),
                pl.BlockSpec((1, C, 1), lambda b, t: (0, 0, 0)),
            ],
            out_specs=pl.BlockSpec((1, 8, 128), lambda b, t: (b, 0, 0)),
            scratch_shapes=[
                pltpu.VMEM((1, tile_t), jnp.float32),   # ce numerator, per-lane partials
                pltpu.VMEM((1, tile_t), jnp.float32),   # ce denominator, per-lane partials
                pltpu.VMEM((C, tile_t), jnp.float32),   # mse, element-wise partials
                pltpu.VMEM((C, 1), jnp.float32),        # temporal halo column
            ],
        ),
        compiler_params=pltpu.CompilerParams(
            dimension_semantics=("parallel", "arbitrary"),
            vmem_limit_bytes=32 * 1024 * 1024,
        ),
        cost_estimate=pl.CostEstimate(
            flops=int(12 * B * C * T),
            transcendentals=int(B * T * (C + 1)),
            bytes_accessed=int(itemsize * B * C * T
                               + (labels3.dtype.itemsize + mask3.dtype.itemsize) * B * T
                               + 4 * B * 8 * 128),
        ),
    )(outp, labels3, mask3, w)

    ce_num = jnp.sum(partials[:, 0, 0])
    ce_den = jnp.sum(partials[:, 0, 1])
    mse_sum = jnp.sum(partials[:, 0, 2])

    # NOTE: if every label is ignore_index, ce_den == 0 and ce is NaN — matches
    # torch.nn.CrossEntropyLoss(reduction='mean') behaviour in that case.
    ce = ce_num / ce_den
    mse = 0.15 * mse_sum / float(B * C * (T - 1))
    return {"full_loss": ce + mse, "ce_loss": ce, "mse_loss": mse}


def _reference(outp, labels, src_mask):
    """Pure-JAX reference mirroring the PyTorch forward."""
    x = jnp.log(outp.astype(jnp.float32) + EPS)
    logp = jax.nn.log_softmax(x, axis=1)
    valid = labels != IGNORE_INDEX
    safe = jnp.where(valid, labels, 0)
    picked = jnp.take_along_axis(logp, safe[:, None, :], axis=1)[:, 0, :]
    w_bt = jnp.asarray(_CLASS_WEIGHTS_NP)[safe]
    validf = valid.astype(jnp.float32)
    ce = jnp.sum(validf * w_bt * (-picked)) / jnp.sum(validf * w_bt)
    diff = x[:, :, 1:] - x[:, :, :-1]
    mse = 0.15 * jnp.mean(jnp.clip(diff * diff, 0.0, 16.0) * src_mask[:, :, 1:])
    return ce, mse, ce + mse


if __name__ == "__main__":
    key = jax.random.PRNGKey(0)
    B, C, T = 2, 14, 1024
    k1, k2, k3 = jax.random.split(key, 3)

    logits = jax.random.normal(k1, (B, C, T), dtype=jnp.float32)
    outp = jax.nn.softmax(logits, axis=1)            # module consumes softmax probabilities
    labels = jax.random.randint(k2, (B, T), 0, C).astype(jnp.int32)
    labels = labels.at[0, 0].set(IGNORE_INDEX)       # exercise ignore_index
    labels = labels.at[1, 513].set(IGNORE_INDEX)     # ... also in a non-first tile
    src_mask = (jax.random.uniform(k3, (B, 1, T)) > 0.2).astype(jnp.float32)
    labels_present = jnp.ones((B,), dtype=jnp.float32)

    # tile_t=256 -> grid (2, 4): exercises T-tiling, halo carry and deferred reduction.
    result = criterion(outp, labels, src_mask, labels_present, tile_t=256)
    jax.block_until_ready(result)

    ce_ref, mse_ref, full_ref = _reference(outp, labels, src_mask)
    np.testing.assert_allclose(np.asarray(result["ce_loss"]), np.asarray(ce_ref),
                               rtol=1e-4, atol=1e-5)
    np.testing.assert_allclose(np.asarray(result["mse_loss"]), np.asarray(mse_ref),
                               rtol=1e-4, atol=1e-5)
    np.testing.assert_allclose(np.asarray(result["full_loss"]), np.asarray(full_ref),
                               rtol=1e-4, atol=1e-5)

    # bf16 probabilities (recommended caller-side: halves the dominant HBM stream);
    # default tile_t -> single full-width tile per row. Math stays f32 in-kernel.
    outp_bf16 = outp.astype(jnp.bfloat16)
    result_bf16 = criterion(outp_bf16, labels, src_mask, labels_present)
    jax.block_until_ready(result_bf16)
    ce_rb, mse_rb, full_rb = _reference(outp_bf16.astype(jnp.float32), labels, src_mask)
    np.testing.assert_allclose(np.asarray(result_bf16["full_loss"]), np.asarray(full_rb),
                               rtol=2e-3, atol=1e-4)

    print("KERNEL_OK")
</pallas_src>

<mosaic_0001>
module attributes {stable_mosaic.version = 11 : i64} {
  func.func @_criterion_kernel(%arg0: i32, %arg1: i32, %arg2: memref<1x14x256xf32, #tpu.memory_space<vmem>>, %arg3: memref<1x1x256xi32, #tpu.memory_space<vmem>>, %arg4: memref<1x1x256xf32, #tpu.memory_space<vmem>>, %arg5: memref<1x14x1xf32, #tpu.memory_space<vmem>>, %arg6: memref<1x8x128xf32, #tpu.memory_space<vmem>>, %arg7: memref<1x256xf32, #tpu.memory_space<vmem>>, %arg8: memref<1x256xf32, #tpu.memory_space<vmem>>, %arg9: memref<14x256xf32, #tpu.memory_space<vmem>>, %arg10: memref<14x1xf32, #tpu.memory_space<vmem>>) attributes {dimension_semantics = [#tpu.dimension_semantics<parallel>, #tpu.dimension_semantics<arbitrary>], iteration_bounds = array<i64: 2, 4>, scalar_prefetch = 0 : i64, scratch_operands = 4 : i64, tpu.core_type = #tpu.core_type<tc>, window_params = [{transform_indices = @transform_0, window_bounds = array<i64: 1, 14, 256>}, {transform_indices = @transform_1, window_bounds = array<i64: 1, 1, 256>}, {transform_indices = @transform_2, window_bounds = array<i64: 1, 1, 256>}, {pipeline_mode = #tpu.pipeline_mode<synchronous>, transform_indices = @transform_3, window_bounds = array<i64: 1, 14, 1>}, {transform_indices = @transform_4, window_bounds = array<i64: 1, 8, 128>}]} {
    %c0 = arith.constant 0 : index
    %c0_0 = arith.constant 0 : index
    %c0_1 = arith.constant 0 : index
    %0 = vector.load %arg2[%c0, %c0_0, %c0_1] : memref<1x14x256xf32, #tpu.memory_space<vmem>>, vector<1x14x256xf32>
    %1 = vector.shape_cast %0 : vector<1x14x256xf32> to vector<14x256xf32>
    %cst = arith.constant 1.000000e-10 : f32
    %2 = vector.broadcast %cst : f32 to vector<14x256xf32>
    %3 = arith.addf %1, %2 : vector<14x256xf32>
    %4 = math.log %3 : vector<14x256xf32>
    %c0_i32 = arith.constant 0 : i32
    %5 = arith.cmpi eq, %arg1, %c0_i32 : i32
    %6 = arith.extui %5 : i1 to i32
    %c0_i32_2 = arith.constant 0 : i32
    %7 = arith.cmpi ne, %6, %c0_i32_2 : i32
    scf.if %7 {
      %cst_37 = arith.constant 0.000000e+00 : f32
      %62 = vector.broadcast %cst_37 : f32 to vector<1x256xf32>
      %c0_38 = arith.constant 0 : index
      %c0_39 = arith.constant 0 : index
      %63 = vector.load %arg7[%c0_38, %c0_39] : memref<1x256xf32, #tpu.memory_space<vmem>>, vector<1x256xf32>
      tpu.vector_store %arg7[%c0_38, %c0_39], %62 {strides = array<i32>} : memref<1x256xf32, #tpu.memory_space<vmem>>, vector<1x256xf32>,
      %cst_40 = arith.constant 0.000000e+00 : f32
      %64 = vector.broadcast %cst_40 : f32 to vector<1x256xf32>
      %c0_41 = arith.constant 0 : index
      %c0_42 = arith.constant 0 : index
      %65 = vector.load %arg8[%c0_41, %c0_42] : memref<1x256xf32, #tpu.memory_space<vmem>>, vector<1x256xf32>
      tpu.vector_store %arg8[%c0_41, %c0_42], %64 {strides = array<i32>} : memref<1x256xf32, #tpu.memory_space<vmem>>, vector<1x256xf32>,
      %cst_43 = arith.constant 0.000000e+00 : f32
      %66 = vector.broadcast %cst_43 : f32 to vector<14x256xf32>
      %c0_44 = arith.constant 0 : index
      %c0_45 = arith.constant 0 : index
      %67 = vector.load %arg9[%c0_44, %c0_45] : memref<14x256xf32, #tpu.memory_space<vmem>>, vector<14x256xf32>
      tpu.vector_store %arg9[%c0_44, %c0_45], %66 {strides = array<i32>} : memref<14x256xf32, #tpu.memory_space<vmem>>, vector<14x256xf32>,
      %68 = vector.extract_strided_slice %4 {offsets = [0, 0], sizes = [14, 1], strides = [1, 1]} : vector<14x256xf32> to vector<14x1xf32>
      %c0_46 = arith.constant 0 : index
      %c0_47 = arith.constant 0 : index
      %69 = vector.load %arg10[%c0_46, %c0_47] : memref<14x1xf32, #tpu.memory_space<vmem>>, vector<14x1xf32>
      tpu.vector_store %arg10[%c0_46, %c0_47], %68 {strides = array<i32>} : memref<14x1xf32, #tpu.memory_space<vmem>>, vector<14x1xf32>,
    } else {
    }
    %cst_3 = arith.constant dense<0.000000e+00> : vector<256xf32>
    %8 = vector.multi_reduction <add>, %1, %cst_3 [0] : vector<14x256xf32> to vector<256xf32>
    %9 = vector.shape_cast %8 : vector<256xf32> to vector<1x256xf32>
    %cst_4 = arith.constant 1.400000e-09 : f32
    %10 = vector.broadcast %cst_4 : f32 to vector<1x256xf32>
    %11 = arith.addf %9, %10 : vector<1x256xf32>
    %12 = math.log %11 : vector<1x256xf32>
    %c0_5 = arith.constant 0 : index
    %c0_6 = arith.constant 0 : index
    %c0_7 = arith.constant 0 : index
    %13 = vector.load %arg3[%c0_5, %c0_6, %c0_7] : memref<1x1x256xi32, #tpu.memory_space<vmem>>, vector<1x1x256xi32>
    %14 = vector.shape_cast %13 : vector<1x1x256xi32> to vector<1x256xi32>
    %15 = tpu.iota {dimensions = array<i32: 0>} : vector<14x256xi32>
    %16 = vector.broadcast %14 : vector<1x256xi32> to vector<14x256xi32>
    %17 = arith.cmpi eq, %15, %16 : vector<14x256xi32>
    %c0_8 = arith.constant 0 : index
    %c0_9 = arith.constant 0 : index
    %c0_10 = arith.constant 0 : index
    %18 = vector.load %arg5[%c0_8, %c0_9, %c0_10] : memref<1x14x1xf32, #tpu.memory_space<vmem>>, vector<1x14x1xf32>
    %19 = vector.shape_cast %18 : vector<1x14x1xf32> to vector<14x1xf32>
    %cst_11 = arith.constant 0.000000e+00 : f32
    %20 = vector.broadcast %cst_11 : f32 to vector<14x256xf32>
    %21 = arith.select %17, %4, %20 : vector<14x256xi1>, vector<14x256xf32>
    %cst_12 = arith.constant dense<0.000000e+00> : vector<256xf32>
    %22 = vector.multi_reduction <add>, %21, %cst_12 [0] : vector<14x256xf32> to vector<256xf32>
    %23 = vector.shape_cast %22 : vector<256xf32> to vector<1x256xf32>
    %cst_13 = arith.constant 0.000000e+00 : f32
    %24 = vector.shape_cast %19 : vector<14x1xf32> to vector<14x1xf32>
    %25 = vector.broadcast %24 : vector<14x1xf32> to vector<14x256xf32>
    %26 = vector.broadcast %cst_13 : f32 to vector<14x256xf32>
    %27 = arith.select %17, %25, %26 : vector<14x256xi1>, vector<14x256xf32>
    %cst_14 = arith.constant dense<0.000000e+00> : vector<256xf32>
    %28 = vector.multi_reduction <add>, %27, %cst_14 [0] : vector<14x256xf32> to vector<256xf32>
    %29 = vector.shape_cast %28 : vector<256xf32> to vector<1x256xf32>
    %30 = arith.subf %12, %23 : vector<1x256xf32>
    %c0_15 = arith.constant 0 : index
    %c0_16 = arith.constant 0 : index
    %31 = vector.load %arg7[%c0_15, %c0_16] : memref<1x256xf32, #tpu.memory_space<vmem>>, vector<1x256xf32>
    %32 = arith.mulf %29, %30 : vector<1x256xf32>
    %33 = arith.addf %31, %32 : vector<1x256xf32>
    %c0_17 = arith.constant 0 : index
    %c0_18 = arith.constant 0 : index
    %34 = vector.load %arg7[%c0_17, %c0_18] : memref<1x256xf32, #tpu.memory_space<vmem>>, vector<1x256xf32>
    tpu.vector_store %arg7[%c0_17, %c0_18], %33 {strides = array<i32>} : memref<1x256xf32, #tpu.memory_space<vmem>>, vector<1x256xf32>,
    %c0_19 = arith.constant 0 : index
    %c0_20 = arith.constant 0 : index
    %35 = vector.load %arg8[%c0_19, %c0_20] : memref<1x256xf32, #tpu.memory_space<vmem>>, vector<1x256xf32>
    %36 = arith.addf %35, %29 : vector<1x256xf32>
    %c0_21 = arith.constant 0 : index
    %c0_22 = arith.constant 0 : index
    %37 = vector.load %arg8[%c0_21, %c0_22] : memref<1x256xf32, #tpu.memory_space<vmem>>, vector<1x256xf32>
    tpu.vector_store %arg8[%c0_21, %c0_22], %36 {strides = array<i32>} : memref<1x256xf32, #tpu.memory_space<vmem>>, vector<1x256xf32>,
    %c1_i32 = arith.constant 1 : i32
    %38 = tpu.dynamic_rotate %4 by %c1_i32 dim 1 : vector<14x256xf32>, i32 -> vector<14x256xf32>
    %39 = tpu.iota {dimensions = array<i32: 1>} : vector<14x256xi32>
    %c0_i32_23 = arith.constant 0 : i32
    %40 = vector.broadcast %c0_i32_23 : i32 to vector<14x256xi32>
    %41 = arith.cmpi eq, %39, %40 : vector<14x256xi32>
    %c0_24 = arith.constant 0 : index
    %c0_25 = arith.constant 0 : index
    %42 = vector.load %arg10[%c0_24, %c0_25] : memref<14x1xf32, #tpu.memory_space<vmem>>, vector<14x1xf32>
    %43 = vector.shape_cast %42 : vector<14x1xf32> to vector<14x1xf32>
    %44 = vector.broadcast %43 : vector<14x1xf32> to vector<14x256xf32>
    %45 = arith.select %41, %44, %38 : vector<14x256xi1>, vector<14x256xf32>
    %46 = arith.subf %4, %45 : vector<14x256xf32>
    %47 = arith.mulf %46, %46 : vector<14x256xf32>
    %cst_26 = arith.constant 1.600000e+01 : f32
    %48 = vector.broadcast %cst_26 : f32 to vector<14x256xf32>
    %49 = arith.minimumf %47, %48 : vector<14x256xf32>
    %c0_27 = arith.constant 0 : index
    %c0_28 = arith.constant 0 : index
    %c0_29 = arith.constant 0 : index
    %50 = vector.load %arg4[%c0_27, %c0_28, %c0_29] : memref<1x1x256xf32, #tpu.memory_space<vmem>>, vector<1x1x256xf32>
    %51 = vector.shape_cast %50 : vector<1x1x256xf32> to vector<1x256xf32>
    %c0_30 = arith.constant 0 : index
    %c0_31 = arith.constant 0 : index
    %52 = vector.load %arg9[%c0_30, %c0_31] : memref<14x256xf32, #tpu.memory_space<vmem>>, vector<14x256xf32>
    %53 = vector.broadcast %51 : vector<1x256xf32> to vector<14x256xf32>
    %54 = arith.mulf %49, %53 : vector<14x256xf32>
    %55 = arith.addf %52, %54 : vector<14x256xf32>
    %c0_32 = arith.constant 0 : index
    %c0_33 = arith.constant 0 : index
    %56 = vector.load %arg9[%c0_32, %c0_33] : memref<14x256xf32, #tpu.memory_space<vmem>>, vector<14x256xf32>
    tpu.vector_store %arg9[%c0_32, %c0_33], %55 {strides = array<i32>} : memref<14x256xf32, #tpu.memory_space<vmem>>, vector<14x256xf32>,
    %57 = vector.extract_strided_slice %4 {offsets = [0, 255], sizes = [14, 1], strides = [1, 1]} : vector<14x256xf32> to vector<14x1xf32>
    %c0_34 = arith.constant 0 : index
    %c0_35 = arith.constant 0 : index
    %58 = vector.load %arg10[%c0_34, %c0_35] : memref<14x1xf32, #tpu.memory_space<vmem>>, vector<14x1xf32>
    tpu.vector_store %arg10[%c0_34, %c0_35], %57 {strides = array<i32>} : memref<14x1xf32, #tpu.memory_space<vmem>>, vector<14x1xf32>,
    %c3_i32 = arith.constant 3 : i32
    %59 = arith.cmpi eq, %arg1, %c3_i32 : i32
    %60 = arith.extui %59 : i1 to i32
    %c0_i32_36 = arith.constant 0 : i32
    %61 = arith.cmpi ne, %60, %c0_i32_36 : i32
    scf.if %61 {
      %c0_37 = arith.constant 0 : index
      %c0_38 = arith.constant 0 : index
      %62 = vector.load %arg7[%c0_37, %c0_38] : memref<1x256xf32, #tpu.memory_space<vmem>>, vector<1x256xf32>
      %63 = vector.shape_cast %62 : vector<1x256xf32> to vector<1x1x256xf32>
      %cst_39 = arith.constant dense<0.000000e+00> : vector<1xf32>
      %64 = vector.multi_reduction <add>, %63, %cst_39 [1, 2] : vector<1x1x256xf32> to vector<1xf32>
      %65 = vector.shape_cast %64 : vector<1xf32> to vector<1x1x1xf32>
      %66 = vector.extract %65[0, 0, 0] : f32 from vector<1x1x1xf32>
      %c0_40 = arith.constant 0 : index
      %c0_41 = arith.constant 0 : index
      %67 = vector.load %arg8[%c0_40, %c0_41] : memref<1x256xf32, #tpu.memory_space<vmem>>, vector<1x256xf32>
      %68 = vector.shape_cast %67 : vector<1x256xf32> to vector<1x1x256xf32>
      %cst_42 = arith.constant dense<0.000000e+00> : vector<1xf32>
      %69 = vector.multi_reduction <add>, %68, %cst_42 [1, 2] : vector<1x1x256xf32> to vector<1xf32>
      %70 = vector.shape_cast %69 : vector<1xf32> to vector<1x1x1xf32>
      %71 = vector.extract %70[0, 0, 0] : f32 from vector<1x1x1xf32>
      %c0_43 = arith.constant 0 : index
      %c0_44 = arith.constant 0 : index
      %72 = vector.load %arg9[%c0_43, %c0_44] : memref<14x256xf32, #tpu.memory_space<vmem>>, vector<14x256xf32>
      %73 = vector.shape_cast %72 : vector<14x256xf32> to vector<1x14x256xf32>
      %cst_45 = arith.constant dense<0.000000e+00> : vector<1xf32>
      %74 = vector.multi_reduction <add>, %73, %cst_45 [1, 2] : vector<1x14x256xf32> to vector<1xf32>
      %75 = vector.shape_cast %74 : vector<1xf32> to vector<1x1x1xf32>
      %76 = vector.extract %75[0, 0, 0] : f32 from vector<1x1x1xf32>
      %77 = tpu.iota {dimensions = array<i32: 1>} : vector<8x128xi32>
      %c0_i32_46 = arith.constant 0 : i32
      %78 = vector.broadcast %c0_i32_46 : i32 to vector<8x128xi32>
      %79 = arith.cmpi eq, %77, %78 : vector<8x128xi32>
      %c1_i32_47 = arith.constant 1 : i32
      %80 = vector.broadcast %c1_i32_47 : i32 to vector<8x128xi32>
      %81 = arith.cmpi eq, %77, %80 : vector<8x128xi32>
      %c2_i32 = arith.constant 2 : i32
      %82 = vector.broadcast %c2_i32 : i32 to vector<8x128xi32>
      %83 = arith.cmpi eq, %77, %82 : vector<8x128xi32>
      %cst_48 = arith.constant 0.000000e+00 : f32
      %84 = vector.broadcast %76 : f32 to vector<8x128xf32>
      %85 = vector.broadcast %cst_48 : f32 to vector<8x128xf32>
      %86 = arith.select %83, %84, %85 : vector<8x128xi1>, vector<8x128xf32>
      %87 = vector.broadcast %71 : f32 to vector<8x128xf32>
      %88 = arith.select %81, %87, %86 : vector<8x128xi1>, vector<8x128xf32>
      %89 = vector.broadcast %66 : f32 to vector<8x128xf32>
      %90 = arith.select %79, %89, %88 : vector<8x128xi1>, vector<8x128xf32>
      %c0_49 = arith.constant 0 : index
      %c0_50 = arith.constant 0 : index
      %c0_51 = arith.constant 0 : index
      %91 = vector.load %arg6[%c0_49, %c0_50, %c0_51] : memref<1x8x128xf32, #tpu.memory_space<vmem>>, vector<1x8x128xf32>
      %92 = vector.shape_cast %91 : vector<1x8x128xf32> to vector<8x128xf32>
      %93 = vector.shape_cast %90 : vector<8x128xf32> to vector<1x8x128xf32>
      tpu.vector_store %arg6[%c0_49, %c0_50, %c0_51], %93 {strides = array<i32>} : memref<1x8x128xf32, #tpu.memory_space<vmem>>, vector<1x8x128xf32>,
    } else {
    }
    return
  }
  func.func @transform_0(%arg0: i32, %arg1: i32) -> (i32, i32, i32) {
    %c0_i32 = arith.constant 0 : i32
    %c0_i32_0 = arith.constant 0 : i32
    return %arg0, %c0_i32, %arg1 : i32, i32, i32
  }
  func.func @transform_1(%arg0: i32, %arg1: i32) -> (i32, i32, i32) {
    %c0_i32 = arith.constant 0 : i32
    %c0_i32_0 = arith.constant 0 : i32
    return %arg0, %c0_i32, %arg1 : i32, i32, i32
  }
  func.func @transform_2(%arg0: i32, %arg1: i32) -> (i32, i32, i32) {
    %c0_i32 = arith.constant 0 : i32
    %c0_i32_0 = arith.constant 0 : i32
    return %arg0, %c0_i32, %arg1 : i32, i32, i32
  }
  func.func @transform_3(%arg0: i32, %arg1: i32) -> (i32, i32, i32) {
    %c0_i32 = arith.constant 0 : i32
    %c0_i32_0 = arith.constant 0 : i32
    %c0_i32_1 = arith.constant 0 : i32
    %c0_i32_2 = arith.constant 0 : i32
    return %c0_i32, %c0_i32_0, %c0_i32_1 : i32, i32, i32
  }
  func.func @transform_4(%arg0: i32, %arg1: i32) -> (i32, i32, i32) {
    %c0_i32 = arith.constant 0 : i32
    %c0_i32_0 = arith.constant 0 : i32
    %c0_i32_1 = arith.constant 0 : i32
    return %arg0, %c0_i32, %c0_i32_0 : i32, i32, i32
  }
}

</mosaic_0001>

<bundles_post_ra>
// kernel: criterion.1
= control target key start
LH: loop header
LB: loop body
LE: loop exit
PB: predicated region body
PF: predicated region fallthrough
CT: control target
= control target key end

     0   :  { %s933_s15 = smov 0   ;;  %s935_s16 = smov 0   ;;  %s1147_s0 = inlined_call_operand.vmem [shape: f32[2,14,1024], index: 0, kind: input, shape index: {}]   ;;  %s1148_s1 = inlined_call_operand.vmem [shape: s32[2,1,1024], index: 1, kind: input, shape index: {}]   ;;  %s1149_s2 = inlined_call_operand.vmem [shape: f32[2,1,1024], index: 2, kind: input, shape index: {}]   ;;  %s1150_s3 = inlined_call_operand.vmem [shape: f32[1,14,1], index: 3, kind: input, shape index: {}]   ;;  %s1151_s4 = inlined_call_operand.vmem [shape: f32[2,8,128], index: 4, kind: output, shape index: {}]  }
   0x1   :  { %s937_s17 = smov 0   ;;  %s939_s18 = smov 0  }
   0x2   :  { %s941_s19 = smov 0   ;;  %s943_s20 = smov 0  }
   0x3   :  { %s945_s21 = smov 0  }
   0x4 LB: > { %s23_s22 = sadd.s32 1, %s894_s19  ;;  %s26_s23 = sadd.s32 1, %s898_s20  ;;  %s902_s21 = sphi %s945_s21, %s14_s21   ;;  %s898_s20 = sphi %s943_s20, %s1157_s20   ;;  %s894_s19 = sphi %s941_s19, %s1156_s19   ;;  %s890_s18 = sphi %s939_s18, %s1155_s18   ;;  %s886_s17 = sphi %s937_s17, %s1154_s17   ;;  %s882_s16 = sphi %s935_s16, %s1153_s16   ;;  %s878_s15 = sphi %s933_s15, %s1152_s15  }
   0x5   : > { %p24_p0 = scmp.ge.s32.totalorder %s23_s22, 4  ;;  %p42_p1 = scmp.ne.s32.totalorder %s882_s16, %s878_s15 }
   0x6   : > { %p43_p2 = scmp.eq.s32.totalorder %s902_s21, 0  ;;  %s35_s27 = sadd.s32 1, %s882_s16 }
   0x7   : > { %s1159_s22 = smov (%p24_p0, %s23_s22), 0  ;;  %s1161_s23 = smov (!%p24_p0, %s26_s23), %s898_s20 }
   0x8   : > { %p44_p3 = por %p43_p2, %p42_p1  ;;  %p28_p4 = scmp.ge.s32.totalorder %s1161_s23, 2 }
   0x9   : > { %s31_s24 = ssub.s32 %s894_s19, %s1159_s22  ;;  %p752_p6 = scmp.ge.s32.totalorder %s902_s21, 8 }
   0xa   : > { %s1163_s23 = smov (%p28_p4, %s1161_s23), 0 }
   0xb   : > { %s30_s25 = ssub.s32 %s898_s20, %s1163_s23  ;;  %174 = sbr.rel (%p752_p6) target bundleno = 27 (0x1b), region = 20 }
   0xc   : > { %s32_s26 = sor.u32 %s31_s24, %s30_s25 }
   0xd   : > { %p33_p5 = scmp.eq.s32.totalorder %s32_s26, 0 }
   0xf   : > { %s984_s28 = scalar_select %p33_p5, %s882_s16, %s35_s27  }
  0x12   : > { %177 = sbr.rel (!%p44_p3) target bundleno = 27 (0x1b), region = 24  ;;  %s179_s29 = sand.u32 (%p44_p3), 1, %s882_s16  }
  0x13   : > { %s754_s30 = sshll.u32 (%p44_p3), %s894_s19, 1  ;;  %s753_s5 = sshll.u32 (%p44_p3), %s179_s29, 5 }
  0x14   : > { %s755_s6 = sshll.u32 (%p44_p3), %s898_s20, 4  ;;  %s181_s12 = scalar_lea.vmem (%p44_p3), [#allocation6], %s753_s5 }
  0x15   : > { %s184_s7 = sadd.s32 (%p44_p3), %s755_s6, %s754_s30 }
  0x16   : > { %s756_s8 = sshll.u32 (%p44_p3), %s184_s7, 3 }
  0x17   : > { %s186_s11 = scalar_lea.vmem (%p44_p3), %s1147_s0, %s756_s8 }
  0x18   : > { %v199_v0 = vld [vmem:[%s186_s11] sm:$0xff] (%p44_p3)  ;;  %v201_v1 = vld [vmem:[%s186_s11 + $0x8] sm:$0xff] (%p44_p3) }
  0x19   : > { %v203_v2 = vld [vmem:[%s186_s11 + $0x40] sm:$0xff]  ;;  %200 = vst [vmem:[%s181_s12] sm:$0xff] %v199_v0  ;;  %202 = vst [vmem:[%s181_s12 + $0x8] sm:$0xff] %v201_v1  ;;  %v205_v3 = vld [vmem:[%s186_s11 + $0x48] sm:$0xff] }
  0x1a   : > { %204 = vst [vmem:[%s181_s12 + $0x10] sm:$0xff] %v203_v2  ;;  %206 = vst [vmem:[%s181_s12 + $0x18] sm:$0xff] %v205_v3 }
  0x1b PF: > { %p757_p7 = scmp.ge.s32.totalorder %s902_s21, 1  ;;  %p235_p8 = scmp.lt.s32.totalorder %s902_s21, 9 }
  0x1d   : > { %p236_p9 = pnand %p757_p7, %p235_p8 }
  0x1e   : > { %s242_s13 = sand.u32 (!%p236_p9), 1, %s878_s15   ;;  %s759_s14 = sshll.u32 (!%p236_p9), %s886_s17, 1 }
  0x1f   : > { %239 = sbr.rel (%p236_p9) target bundleno = 440 (0x1b8), region = 55  ;;  %s758_s24 = sshll.u32 (!%p236_p9), %s242_s13, 5 }
  0x20   : > { %p284_p10 = scmp.lt.s32.totalorder (!%p236_p9), %s890_s18, 1  ;;  %p286_p11 = scmp.lt.s32.totalorder (!%p236_p9), %s759_s14, 7 }
  0x21   : > { %s244_s25 = scalar_lea.vmem (!%p236_p9), [#allocation6], %s758_s24  ;;  %p764_p12 = scmp.ne.s32.totalorder (!%p236_p9), %s886_s17, 0 }
  0x22   : > { %v999_v4 = vld [vmem:[%s244_s25] sm:$0xff] (!%p236_p9)  ;;  %v1001_v5 = vld [vmem:[%s244_s25 + $0x8] sm:$0xff] (!%p236_p9)  ;;  %v307_v6 = vld [vmem:[%s244_s25 + $0x10] sm:$0x3f] (!%p236_p9) }
  0x23   : > { %v308_v7 = vld [vmem:[%s244_s25 + $0x18] sm:$0x3f] (!%p236_p9)  ;;  %v309_v8 = vadd.f32 (!%p236_p9), 1e-10, %v999_v4  ;;  %v310_v9 = vadd.f32 (!%p236_p9), 1e-10, %v1001_v5 }
  0x24   : > { %v311_v10 = vadd.f32 (!%p236_p9), 1e-10, %v307_v6  ;;  %v312_v11 = vadd.f32 (!%p236_p9), 1e-10, %v308_v7 }
  0x25   : > { %834 = vlog2.f32 (!%p236_p9), %v309_v8 }
  0x26   : > { %s1165_s18 = smov (!%p284_p10, %s890_s18), 1  ;;  %s1167_s14 = smov (!%p286_p11, %s759_s14), 7  ;;  %836 = vlog2.f32 %v310_v9 }
  0x27   : > { %s760_s26 = sshll.u32 %s1165_s18, 3  ;;  %838 = vlog2.f32 %v311_v10  ;;  %v325_v20 = vlaneseq (!%p764_p12)  ;;  %vm335_vm0 = vcmask (!%p764_p12), 7168   ;;  %vm337_vm1 = vcmask (!%p764_p12), 5120  }
  0x28   : > { %s1005_s15 = sadd.s32 %s760_s26, %s1167_s14  ;;  %s1010_s30 = scalar_lea.vmem %s1151_s4, %s760_s26  ;;  %840 = vlog2.f32 %v312_v11  ;;  %v904_v21 = vmov (!%p764_p12), 0.0  }
  0x29   : > { %s290_s7 = scalar_lea.vmem %s1148_s1, %s1005_s15  ;;  %s299_s9 = scalar_lea.vmem %s1149_s2, %s1005_s15  ;;  %331 = vst [vmem:[#allocation4] sm:$0xff] (!%p764_p12), %v904_v21  ;;  %332 = vst [vmem:[#allocation4 + $0x8] sm:$0xff] (!%p764_p12), %v904_v21  ;;  %vm327_vm2 = vcmp.lt.s32.totalorder (!%p764_p12), %v325_v20, 256 }
  0x2a   : > { %333 = vst [vmem:[#allocation4 + $0x10] sm:$0x3f] (!%p764_p12), %v904_v21  ;;  %334 = vst [vmem:[#allocation4 + $0x18] sm:$0x3f] (!%p764_p12), %v904_v21 }
  0x2b   : > { %329 = vst.msk [vmem:[#allocation2] sm:$0x3] (!%p764_p12), %vm327_vm2, %v904_v21  ;;  %330 = vst.msk [vmem:[#allocation3] sm:$0x3] (!%p764_p12), %vm327_vm2, %v904_v21 }
  0x2d   : > { %324 = sbr.rel (%p764_p12) target bundleno = 53 (0x35), region = 63 }
  0x2f   : > { %v835_v12 = vpop.eup %834 }
  0x30   : > { %v837_v13 = vpop.eup %836  ;;  %v1020_v14 = vmul.f32 0.6931472, %v835_v12 }
  0x31   : > { %v839_v15 = vpop.eup %838  ;;  %v1022_v16 = vmul.f32 0.6931472, %v837_v13 }
  0x32   : > { %v841_v17 = vpop.eup %840  ;;  %v1024_v18 = vmul.f32 0.6931472, %v839_v15  ;;  %336 = vst.msk [vmem:[#allocation5] sm:$0xff] (!%p764_p12), %vm335_vm0, %v1020_v14 }
  0x33   : > { %v1026_v19 = vmul.f32 0.6931472, %v841_v17 }
  0x34   : > { %338 = vst.msk [vmem:[#allocation5 + $0x8] sm:$0x3f] %vm337_vm1, %v1024_v18 }
  0x35 PF: > { %v379_v23 = vld [vmem:[%s1150_s3 + $0x8] sm:$0x3f]  ;;  %v905_v24 = vmov 0   ;;  %v378_v26 = vld [vmem:[%s1150_s3] sm:$0xff]  ;;  %s906_s14 = smov 1   ;;  %vm339_vm3 = vcmask 1045504   ;;  %v363_v27 = vlaneseq }
  0x36   : > { %843 = vset.pattern.permute.xlu1 %v905_v24  ;;  %842 = vset.pattern.permute.xlu0 %v905_v24  ;;  %v340_v28 = vsel %vm339_vm3, %v307_v6, 0.0  ;;  %v348_v30 = vsel %vm339_vm3, %v308_v7, 0.0  ;;  %v362_v35 = vld [vmem:[%s290_s7] sm:$0x3]  ;;  %v907_v10 = vmov 1966171168  }
  0x37   : > { %407 = vperm.xlu0 %842, %v379_v23   ;;  %v341_v29 = vadd.f32 %v340_v28, %v999_v4  ;;  %v1047_v31 = vshrl.u32 %v363_v27, 7  ;;  %v349_v32 = vadd.f32 %v348_v30, %v1001_v5  ;;  %v439_v11 = vunpack.c.l.s4 %v907_v10  ;;  %p765_p13 = scmp.ne.s32.totalorder %s886_s17, 3 }
  0x38   : > { %vm564_vm10 = vcmask 5120   ;;  %vm562_vm11 = vcmask 7168   ;;  %vm456_vm12 = vcmp.lt.s32.totalorder %v363_v27, 256  ;;  %vm582_vm13 = vcmask (!%p765_p13), 1040384  }
  0x39   : > { %v342_v33 = vrot.slane %v341_v29, 4  ;;  %v1051_v34 = vsub.s32 0, %v1047_v31  ;;  %v350_v36 = vrot.slane %v349_v32, 4  ;;  %v1059_v37 = vsub.s32 1, %v1047_v31 }
  0x3a   : > { %v498_v22 = vld [vmem:[#allocation5] sm:$0xff]  ;;  %v365_v38 = vadd.s32 8, %v1047_v31 }
  0x3b   : > { %502 = vperm.xlu1 %843, %v498_v22   ;;  %v499_v25 = vld [vmem:[#allocation5 + $0x8] sm:$0x3f]  ;;  %402 = vperm.xlu0 %842, %v378_v26   ;;  %v369_v39 = vrot.slane %v362_v35, %v1051_v34  ;;  %v343_v40 = vadd.f32 %v342_v33, %v341_v29  ;;  %v373_v41 = vrot.slane %v362_v35, %v1059_v37 }
  0x3c   : > { %v351_v42 = vadd.f32 %v350_v36, %v349_v32 }
  0x3d   : > { %vm376_vm4 = vcmp.eq.s32.totalorder %v365_v38, %v369_v39  ;;  %v344_v43 = vrot.slane %v343_v40, 2  ;;  %vm377_vm5 = vcmp.eq.s32.totalorder %v365_v38, %v373_v41  ;;  %vm374_vm6 = vcmp.eq.s32.totalorder %v1047_v31, %v369_v39  ;;  %v526_v38 = vld [vmem:[%s299_s9] sm:$0x3] }
  0x3e   : > { %v382_v44 = vsel %vm376_vm4, %v1024_v18, 0.0  ;;  %v352_v45 = vrot.slane %v351_v42, 2  ;;  %v383_v47 = vsel %vm377_vm5, %v1026_v19, 0.0  ;;  %vm375_vm7 = vcmp.eq.s32.totalorder %v1047_v31, %v373_v41 }
  0x3f   : > { %507 = vperm.xlu1 %843, %v499_v25   ;;  %480 = vrot.lane.b32.xlu0 %v1020_v14, %s906_s14  ;;  %v345_v46 = vadd.f32 %v344_v43, %v343_v40  ;;  %v384_v48 = vsel %vm339_vm3, %v382_v44, 0.0  ;;  %v380_v49 = vsel %vm374_vm6, %v1020_v14, 0.0  ;;  %v392_v52 = vsel %vm339_vm3, %v383_v47, 0.0 }
  0x40   : > { %v353_v50 = vadd.f32 %v352_v45, %v351_v42  ;;  %v381_v53 = vsel %vm375_vm7, %v1022_v16, 0.0  ;;  %v385_v54 = vadd.f32 %v384_v48, %v380_v49  ;;  %v1087_v25 = vand.u32 127, %v363_v27 }
  0x41   : > { %v346_v51 = vrot.slane %v345_v46, 1  ;;  %v393_v57 = vadd.f32 %v392_v52, %v381_v53  ;;  %v440_v39 = vunpack.c.0.s8 %v439_v11  ;;  %v539_v44 = vrot.slane %v526_v38, %v1059_v37 }
  0x42   : > { %v354_v55 = vrot.slane %v353_v50, 1  ;;  %v386_v58 = vrot.slane %v385_v54, 4  ;;  %vm490_vm8 = vcmp.lt.s32.totalorder %v1087_v25, 1  ;;  %vm496_vm9 = vcmp.eq.s32.totalorder %v1087_v25, 0 }
  0x43   : > { %482 = vrot.lane.b32.xlu1 %v1024_v18, %s906_s14  ;;  %484 = vrot.lane.b32.xlu0 %v1022_v16, %s906_s14  ;;  %v347_v56 = vadd.f32 %v346_v51, %v345_v46  ;;  %v394_v61 = vrot.slane %v393_v57, 4  ;;  %vm638_vm14 = vcmp.eq.s32.totalorder (!%p765_p13), %v1087_v25, 2  ;;  %vm637_vm15 = vcmp.eq.s32.totalorder (!%p765_p13), %v1087_v25, 1 }
  0x44   : > { %v355_v59 = vadd.f32 %v354_v55, %v353_v50  ;;  %v387_v62 = vadd.f32 %v386_v58, %v385_v54 }
  0x45   : > { %v356_v60 = vadd.f32 1.4e-09, %v347_v56  ;;  %v395_v0 = vadd.f32 %v394_v61, %v393_v57 }
  0x46   : > { %v357_v63 = vadd.f32 1.4e-09, %v355_v59  ;;  %v388_v1 = vrot.slane %v387_v62, 2 }
  0x47   : > { %486 = vrot.lane.b32.xlu1 %v1026_v19, %s906_s14  ;;  %556 = vrot.lane.b32.xlu0 %v1022_v16, %s906_s14  ;;  %844 = vlog2.f32 %v356_v60  ;;  %v396_v2 = vrot.slane %v395_v0, 2 }
  0x48   : > { %846 = vlog2.f32 %v357_v63  ;;  %v389_v5 = vadd.f32 %v388_v1, %v387_v62 }
  0x49   : > { %v397_v8 = vadd.f32 %v396_v2, %v395_v0 }
  0x4a   : > { %v390_v13 = vrot.slane %v389_v5, 1 }
  0x4b   : > { %558 = vrot.lane.b32.xlu1 %v1026_v19, %s906_s14  ;;  %v398_v26 = vrot.slane %v397_v8, 1 }
  0x4c   : > { %v391_v30 = vadd.f32 %v390_v13, %v389_v5  ;;  %v443_v5 = vsub.s32 %v440_v39, %v1047_v31 }
  0x4d   : > { %v399_v43 = vadd.f32 %v398_v26, %v397_v8 }
  0x51   : > { %v845_v15 = vpop.eup %844 }
  0x52   : > { %v847_v28 = vpop.eup %846  ;;  %v359_v29 = vmul.f32 0.6931472, %v845_v15  ;;  %v529_v15 = vld [vmem:[#allocation4 + $0x10] sm:$0x3f] }
  0x53   : > { %v361_v42 = vmul.f32 0.6931472, %v847_v28  ;;  %v527_v28 = vld [vmem:[#allocation4] sm:$0xff] }
  0x54   : > { %v430_v47 = vsub.f32 %v359_v29, %v391_v30  ;;  %v459_v29 = vld [vmem:[#allocation3] sm:$0x3] }
  0x55   : > { %v431_v58 = vsub.f32 %v361_v42, %v399_v43 }
  0xb6   : > { %v408_v4 = vpop.permute.xlu0 %407 }
  0xb7   : > { %v412_v6 = vsel %vm376_vm4, %v408_v4, 0.0  ;;  %v413_v7 = vsel %vm377_vm5, %v408_v4, 0.0 }
  0xb8   : > { %v414_v17 = vsel %vm339_vm3, %v412_v6, 0.0  ;;  %v422_v20 = vsel %vm339_vm3, %v413_v7, 0.0 }
  0xba   : > { %v503_v3 = vpop.permute.xlu1 %502  ;;  %v403_v12 = vpop.permute.xlu0 %402 }
  0xbb   : > { %v410_v21 = vsel %vm374_vm6, %v403_v12, 0.0  ;;  %v411_v22 = vsel %vm375_vm7, %v403_v12, 0.0 }
  0xbc   : > { %v415_v23 = vadd.f32 %v414_v17, %v410_v21  ;;  %v423_v24 = vadd.f32 %v422_v20, %v411_v22  ;;  %v528_v17 = vld [vmem:[#allocation4 + $0x8] sm:$0xff] }
  0xbe   : > { %v508_v9 = vpop.permute.xlu1 %507  ;;  %v416_v32 = vrot.slane %v415_v23, 4  ;;  %v424_v33 = vrot.slane %v423_v24, 4  ;;  %v481_v36 = vpop.permute.xlu0 %480 }
  0xc0   : > { %v417_v40 = vadd.f32 %v416_v32, %v415_v23  ;;  %v425_v41 = vadd.f32 %v424_v33, %v423_v24 }
  0xc2   : > { %v483_v35 = vpop.permute.xlu1 %482  ;;  %v418_v45 = vrot.slane %v417_v40, 2  ;;  %v426_v46 = vrot.slane %v425_v41, 2  ;;  %v485_v49 = vpop.permute.xlu0 %484 }
  0xc3   : > { %v491_v52 = vsel %vm490_vm8, %v481_v36, %v485_v49  ;;  %v493_v53 = vsel %vm490_vm8, %v485_v49, %v481_v36 }
  0xc4   : > { %v419_v54 = vadd.f32 %v418_v45, %v417_v40  ;;  %v427_v55 = vadd.f32 %v426_v46, %v425_v41  ;;  %v510_v60 = vsel %vm496_vm9, %v503_v3, %v493_v53  ;;  %v515_v61 = vsub.f32 %v1022_v16, %v491_v52 }
  0xc5   : > { %v514_v1 = vsub.f32 %v1020_v14, %v510_v60 }
  0xc6   : > { %v487_v48 = vpop.permute.xlu1 %486  ;;  %v420_v62 = vrot.slane %v419_v54, 1  ;;  %v428_v63 = vrot.slane %v427_v55, 1  ;;  %v557_v4 = vpop.permute.xlu0 %556  ;;  %v519_v7 = vmul.f32 %v515_v61, %v515_v61 }
  0xc7   : > { %v492_v50 = vsel %vm490_vm8, %v483_v35, %v487_v48  ;;  %v494_v51 = vsel %vm490_vm8, %v487_v48, %v483_v35  ;;  %563 = vst.msk [vmem:[#allocation5] sm:$0xff] %vm562_vm11, %v557_v4  ;;  %v518_v8 = vmul.f32 %v514_v1, %v514_v1 }
  0xc8   : > { %v512_v56 = vsel %vm496_vm9, %v508_v9, %v494_v51  ;;  %v517_v57 = vsub.f32 %v1026_v19, %v492_v50  ;;  %v535_v19 = vrot.slane %v526_v38, %v1051_v34  ;;  %v429_v3 = vadd.f32 %v428_v63, %v427_v55  ;;  %v530_v9 = vld [vmem:[#allocation4 + $0x18] sm:$0x3f] }
  0xc9   : > { %v516_v59 = vsub.f32 %v1024_v18, %v512_v56  ;;  %v421_v18 = vadd.f32 %v420_v62, %v419_v54  ;;  %v523_v11 = vmin.f32 %v519_v7, 16.0  ;;  %v522_v21 = vmin.f32 %v518_v8, 16.0  ;;  %v432_v38 = vld [vmem:[#allocation2] sm:$0x3] }
  0xca   : > { %v521_v0 = vmul.f32 %v517_v57, %v517_v57  ;;  %v559_v2 = vpop.permute.xlu1 %558  ;;  %v434_v12 = vmul.f32 %v431_v58, %v429_v3 }
  0xcb   : > { %v520_v6 = vmul.f32 %v516_v59, %v516_v59  ;;  %565 = vst.msk [vmem:[#allocation5 + $0x8] sm:$0x3f] %vm564_vm10, %v559_v2  ;;  %v433_v14 = vmul.f32 %v430_v47, %v421_v18  ;;  %v462_v13 = vcombine.low %v421_v18, %v429_v3  ;;  %v543_v22 = vmul.f32 %v539_v44, %v523_v11 }
  0xcc   : > { %v525_v16 = vmin.f32 %v521_v0, 16.0  ;;  %v542_v32 = vmul.f32 %v535_v19, %v522_v21 }
  0xcd   : > { %v524_v10 = vmin.f32 %v520_v6, 16.0  ;;  %v437_v23 = vcombine.low %v433_v14, %v434_v12  ;;  %v469_v24 = vrot.slane %v462_v13, %v443_v5  ;;  %v547_v33 = vadd.f32 %v543_v22, %v528_v17 }
  0xce   : > { %v545_v31 = vmul.f32 %v539_v44, %v525_v16  ;;  %v546_v39 = vadd.f32 %v542_v32, %v527_v28 }
  0xcf   : > { %v544_v20 = vmul.f32 %v535_v19, %v524_v10  ;;  %v444_v35 = vrot.slane %v437_v23, %v443_v5  ;;  %v476_v36 = vrot.slane %v469_v24, %v443_v5  ;;  %551 = vst [vmem:[#allocation4 + $0x8] sm:$0xff] %v547_v33  ;;  %569 = sbr.rel (%p765_p13) target bundleno = 440 (0x1b8), region = 67 }
  0xd0   : > { %v549_v26 = vadd.f32 %v545_v31, %v530_v9  ;;  %550 = vst [vmem:[#allocation4] sm:$0xff] %v546_v39 }
  0xd1   : > { %v548_v30 = vadd.f32 %v544_v20, %v529_v15  ;;  %v451_v40 = vrot.slane %v444_v35, %v443_v5  ;;  %v478_v41 = vadd.f32 %v476_v36, %v459_v29 }
  0xd2   : > { %553 = vst [vmem:[#allocation4 + $0x18] sm:$0x3f] %v549_v26 }
  0xd3   : > { %552 = vst [vmem:[#allocation4 + $0x10] sm:$0x3f] %v548_v30  ;;  %v453_v42 = vadd.f32 %v451_v40, %v432_v38  ;;  %479 = vst.msk [vmem:[#allocation3] sm:$0x3] %vm456_vm12, %v478_v41 }
  0xd5   : > { %458 = vst.msk [vmem:[#allocation2] sm:$0x3] %vm456_vm12, %v453_v42 }
  0xd6   : > { %v620_v45 = vld [vmem:[#allocation4 + $0x8] sm:$0xff] }
  0xd7   : > { %v619_v44 = vld [vmem:[#allocation4] sm:$0xff] }
  0xd8   : > { %v623_v49 = vadd.f32 %v620_v45, %v619_v44 }
  0xd9   : > { %v622_v48 = vld [vmem:[#allocation4 + $0x18] sm:$0x3f] }
  0xda   : > { %v621_v47 = vld [vmem:[#allocation4 + $0x10] sm:$0x3f]  ;;  %v595_v50 = vld [vmem:[#allocation3] sm:$0x3]  ;;  %v626_v52 = vsel %vm339_vm3, %v622_v48, 0.0 }
  0xdb   : > { %v624_v51 = vsel %vm339_vm3, %v621_v47, 0.0  ;;  %v600_v53 = vrot.slane %v595_v50, %v1051_v34  ;;  %v604_v54 = vrot.slane %v595_v50, %v1059_v37 }
  0xdc   : > { %v570_v43 = vld [vmem:[#allocation2] sm:$0x3]  ;;  %v625_v57 = vadd.f32 %v624_v51, %v623_v49 }
  0xdd   : > { %v575_v46 = vrot.slane %v570_v43, %v1051_v34  ;;  %v579_v27 = vrot.slane %v570_v43, %v1059_v37  ;;  %v607_v59 = vsel %vm582_vm13, %v600_v53, 0.0  ;;  %v608_v60 = vsel %vm582_vm13, %v604_v54, 0.0 }
  0xde   : > { %v627_v61 = vadd.f32 %v626_v52, %v625_v57  ;;  %v609_v62 = vadd.f32 %v608_v60, %v607_v59 }
  0xdf   : > { %v583_v55 = vsel %vm582_vm13, %v575_v46, 0.0  ;;  %v584_v56 = vsel %vm582_vm13, %v579_v27, 0.0 }
  0xe0   : > { %v585_v58 = vadd.f32 %v584_v56, %v583_v55  ;;  %628 = vadd.xlane.f32.xlu1 %v627_v61 }
  0xe2   : > { %586 = vadd.xlane.f32.xlu0 %v585_v58 }
  0xe6   : > { %610 = vadd.xlane.f32.xlu0 %v609_v62 }
 0x16d   : > { %v629_v34 = vpop.xlane.xlu1 %628 }
 0x16e   : > { %v630_v1 = vrot.slane %v629_v34, 4 }
 0x16f   : > { %v587_v63 = vpop.xlane.xlu0 %586 }
 0x170   : > { %v588_v0 = vrot.slane %v587_v63, 4  ;;  %v631_v2 = vadd.f32 %v630_v1, %v629_v34 }
 0x172   : > { %v589_v37 = vadd.f32 %v588_v0, %v587_v63  ;;  %v632_v19 = vrot.slane %v631_v2, 2 }
 0x173   : > { %v611_v4 = vpop.xlane.xlu0 %610 }
 0x174   : > { %v590_v5 = vrot.slane %v589_v37, 2  ;;  %v612_v6 = vrot.slane %v611_v4, 4  ;;  %v633_v3 = vadd.f32 %v632_v19, %v631_v2 }
 0x176   : > { %v613_v7 = vadd.f32 %v612_v6, %v611_v4  ;;  %v591_v18 = vadd.f32 %v590_v5, %v589_v37  ;;  %v634_v11 = vrot.slane %v633_v3, 1 }
 0x178   : > { %v614_v16 = vrot.slane %v613_v7, 2  ;;  %v592_v8 = vrot.slane %v591_v18, 1  ;;  %v635_v13 = vadd.f32 %v634_v11, %v633_v3 }
 0x17a   : > { %v615_v9 = vadd.f32 %v614_v16, %v613_v7  ;;  %v593_v10 = vadd.f32 %v592_v8, %v591_v18 }
 0x17c   : > { %768 = vpush %v593_v10  ;;  %v616_v14 = vrot.slane %v615_v9, 1 }
 0x17e   : > { %v617_v12 = vadd.f32 %v616_v14, %v615_v9 }
 0x180   : > { %770 = vpush %v617_v12 }
 0x181   : > { %772 = vpush %v635_v13 }
 0x1ad   : > { %s769_s17 = spop %768 }
 0x1ae   : > { %v643_v20 = vstv %s769_s17 }
 0x1b1   : > { %s771_s15 = spop %770 }
 0x1b2   : > { %v641_v15 = vstv %s771_s15  ;;  %s773_s29 = spop %772 }
 0x1b3   : > { %v639_v31 = vstv %s773_s29 }
 0x1b4   : > { %v640_v17 = vsel %vm638_vm14, %v639_v31, 0.0 }
 0x1b5   : > { %v642_v21 = vsel %vm637_vm15, %v641_v15, %v640_v17 }
 0x1b6   : > { %v644_v22 = vsel %vm496_vm9, %v643_v20, %v642_v21 }
 0x1b7   : > { %645 = vst [vmem:[%s1010_s30] sm:$0xff] %v644_v22 }
 0x1b8 PF: > { %s14_s21 = sadd.s32 1, %s902_s21   ;;  %s1152_s15 = smov %s882_s16 }
 0x1b9   : > { %p11_p0 = scmp.ge.s32.totalorder %s14_s21, 10   ;;  %s1153_s16 = smov %s984_s28 }
 0x1ba   : > { %s1154_s17 = smov %s894_s19  ;;  %s1155_s18 = smov %s898_s20 }
 0x1bb   : > { %s1156_s19 = smov %s1159_s22  ;;  %s1157_s20 = smov %s1163_s23 }
 0x1bc   :  { %13 = sbr.rel (!%p11_p0) target bundleno = 4 (0x4), region = 108 }

</bundles_post_ra>
